<compile_context>
chip_gen: v6e
topology: v6e:2x2x1
jax: 0.10.0
libtpu: 0.0.40
codegen_flags: <defaults>
</compile_context>

<pallas_src>
import functools
import math

import jax
import jax.numpy as jnp
from jax.experimental import pallas as pl
from jax.experimental.pallas import tpu as pltpu

NEG_SLOPE = 0.01  # nn.LeakyReLU default negative_slope


def _round_up(n, m):
    return ((n + m - 1) // m) * m


def _cdiv(a, b):
    return -(-a // b)


# ----------------------------- kernel body ---------------------------------
def _skipconn_kernel(x_ref, wx_ref, bx_ref, w0c_ref, wpc_ref, wopc_ref,
                     wox_ref, bo_ref, out_ref, pc_ref, *, n_layers, hp, i_size):
    f32 = jnp.float32
    bf16 = jnp.bfloat16
    x = x_ref[...]

    # x-projection slab on the VPU (K == init_size is tiny; keep the MXU for
    # the wide hidden-layer matmuls).  All biases are folded into bx.
    wx = wx_ref[...]
    slab = x[:, 0:1] * wx[0:1, :] + bx_ref[...]
    for j in range(1, i_size):
        slab = slab + x[:, j:j + 1] * wx[j:j + 1, :]

    cur0 = slab[:, :hp]                                 # inLayer(x), no act

    # Layer 0: prev is empty -> single (Hp, Hp) matmul on cur only.
    z = (jnp.dot(cur0.astype(bf16), w0c_ref[...], preferred_element_type=f32)
         + slab[:, hp:2 * hp])
    cur = jnp.where(z >= 0, z, NEG_SLOPE * z)           # LeakyReLU

    # Ping-pong scratch layout after layer 0: half1 <- cur0 (prev), half0 <- cur.
    pc_ref[:, hp:] = cur0.astype(bf16)
    pc_ref[:, :hp] = cur.astype(bf16)

    # Layers 1..L-1: merged (2*Hp, Hp) matmul on the packed scratch; the new
    # activation overwrites whichever half holds the stale prev, so no
    # activation concatenation / copy is ever materialized.
    for i in range(1, n_layers):
        z = (jnp.dot(pc_ref[...], wpc_ref[i - 1], preferred_element_type=f32)
             + slab[:, (i + 1) * hp:(i + 2) * hp])
        cur = jnp.where(z >= 0, z, NEG_SLOPE * z)
        if i % 2 == 1:
            pc_ref[:, hp:] = cur.astype(bf16)
        else:
            pc_ref[:, :hp] = cur.astype(bf16)

    # Output layer (N = 1) on the VPU: broadcast multiply + lane reduction.
    pc = pc_ref[...].astype(f32)
    y = (jnp.sum(pc * wopc_ref[...], axis=-1, keepdims=True)
         + jnp.sum(x * wox_ref[...], axis=-1, keepdims=True)
         + bo_ref[...])
    out_ref[...] = jax.nn.sigmoid(y)


# --------------------------- VMEM / tile sizing -----------------------------
def _physical_vmem_bytes():
    try:
        return int(pltpu.get_tpu_info().vmem_capacity_bytes)
    except Exception:
        return 64 << 20  # conservative default: v7x per-TensorCore VMEM


def _vmem_need_bytes(tb, i_size, hp, n_layers):
    f32, bf16 = 4, 2
    wcols = (n_layers + 1) * hp
    weights = (i_size * wcols * f32 + wcols * f32            # wx_all, bx_all
               + hp * hp * bf16                              # w0c
               + max(n_layers - 1, 1) * 2 * hp * hp * bf16   # w_pc
               + 2 * hp * f32 + i_size * f32 + f32)          # wo_pc, wo_x, bo
    io_blocks = tb * i_size * f32 + tb * f32                 # x tile + out tile
    scratch = tb * 2 * hp * bf16                             # pc ping-pong
    temps = tb * wcols * f32 + 3 * tb * hp * f32             # slab + z/cur/casts
    # Pipeline double-buffers streamed x/out tiles and the (grid-invariant)
    # weight blocks; the scratch and in-kernel temporaries are single.
    return 2 * (weights + io_blocks) + scratch + temps + (4 << 20)


def _choose_tb(i_size, hp, n_layers, budget):
    for tb in (2048, 1024, 512, 256, 128):
        if _vmem_need_bytes(tb, i_size, hp, n_layers) <= budget:
            return tb
    return 128


def _const_map(ndim):
    idx = (0,) * ndim
    return lambda i: idx


# ------------------------------- wrapper ------------------------------------
def skipconn_forward(x, params, *, block_b=None):
    B, I = x.shape
    hp = int(params["hp"])
    L = int(params["n_layers"])

    phys = _physical_vmem_bytes()
    budget = max(int(phys * 0.8) - (4 << 20), 24 << 20)

    tb = int(block_b) if block_b is not None else _choose_tb(I, hp, L, budget)
    if B < 256:
        tb = min(tb, _round_up(max(B, 1), 8))      # single small tile
    else:
        # >= 2 grid steps so the "parallel" axis shards across v7x's 2 TCs.
        tb = min(tb, max(128, _round_up(_cdiv(B, 2), 128)))
    Bp = _round_up(B, tb)
    if Bp != B:
        x = jnp.pad(x, ((0, Bp - B), (0, 0)))
    nb = Bp // tb

    weights = (params["wx_all"], params["bx_all"], params["w0c"],
               params["w_pc"], params["wo_pc"], params["wo_x"], params["bo"])
    w_specs = [pl.BlockSpec(w.shape, _const_map(w.ndim)) for w in weights]

    kernel = functools.partial(_skipconn_kernel, n_layers=L, hp=hp, i_size=I)

    grid_spec = pltpu.PrefetchScalarGridSpec(
        num_scalar_prefetch=0,
        grid=(nb,),
        in_specs=[pl.BlockSpec((tb, I), lambda i: (i, 0))] + w_specs,
        out_specs=pl.BlockSpec((tb, 1), lambda i: (i, 0)),
        scratch_shapes=[pltpu.VMEM((tb, 2 * hp), jnp.bfloat16)],
    )

    need = _vmem_need_bytes(tb, I, hp, L)
    vmem_limit = int(min(max(need, 32 << 20), int(phys * 0.9)))

    out = pl.pallas_call(
        kernel,
        out_shape=jax.ShapeDtypeStruct((Bp, 1), jnp.float32),
        grid_spec=grid_spec,
        compiler_params=pltpu.CompilerParams(
            dimension_semantics=("parallel",),
            vmem_limit_bytes=vmem_limit),
    )(x, *weights)
    return out[:B]


# ----------------------------- parameter setup ------------------------------
def _linear_init(key, fan_in, fan_out):
    """Deterministic init matching nn.Linear's U(-1/sqrt(fan_in), 1/sqrt(fan_in))."""
    kw, kb = jax.random.split(key)
    bound = 1.0 / math.sqrt(fan_in)
    w = jax.random.uniform(kw, (fan_out, fan_in), jnp.float32, -bound, bound)
    b = jax.random.uniform(kb, (fan_out,), jnp.float32, -bound, bound)
    return w, b


def init_params(key, hidden_size=100, num_hidden_layers=7, init_size=2):
    """Returns (raw PyTorch-layout params, kernel-layout params)."""
    H, L, I = hidden_size, num_hidden_layers, init_size
    keys = jax.random.split(key, L + 2)

    w_in, b_in = _linear_init(keys[0], I, H)
    hidden = []
    for i in range(L):
        in_size = (2 * H + I) if i > 0 else (H + I)
        hidden.append(_linear_init(keys[1 + i], in_size, H))
    w_out, b_out = _linear_init(keys[L + 1], 2 * H + I, 1)

    raw = {"w_in": w_in, "b_in": b_in, "hidden": hidden,
           "w_out": w_out, "b_out": b_out}

    # ----------------------------- kernel layout ----------------------------
    Hp = _round_up(H, 128)   # lane-dense hidden width; padded lanes stay zero
    bf16 = jnp.bfloat16

    def col_group(w_t, b):   # w_t: (I, H), b: (H,)
        return (jnp.pad(w_t, ((0, 0), (0, Hp - H))), jnp.pad(b, (0, Hp - H)))

    # Hoisted x-projection slab (VPU path, f32): column groups
    # [inLayer | layer0.x | ... | layer(L-1).x], biases folded in.
    x_cols, b_cols = [], []
    wc, bc = col_group(w_in.T, b_in)
    x_cols.append(wc); b_cols.append(bc)
    for (W, b) in hidden:
        wc, bc = col_group(W[:, -I:].T, b)
        x_cols.append(wc); b_cols.append(bc)
    wx_all = jnp.concatenate(x_cols, axis=1)               # (I, (L+1)*Hp) f32
    bx_all = jnp.concatenate(b_cols)[None, :]               # (1, (L+1)*Hp) f32

    # Layer 0: prev is empty -> only an (Hp, Hp) cur weight (bf16 MXU operand).
    W0 = hidden[0][0]
    w0c = (jnp.zeros((Hp, Hp), jnp.float32)
           .at[:H, :H].set(W0[:, :H].T).astype(bf16))

    # Layers 1..L-1: merged [prev ; cur] weight, pre-swapped per parity so the
    # ping-pong scratch halves never move:
    #   even i: pc = [prev | cur] -> rows [Wp ; Wc]
    #   odd  i: pc = [cur  | prev] -> rows [Wc ; Wp]
    wpc = []
    for i in range(1, L):
        W = hidden[i][0]
        Wp, Wc = W[:, :H].T, W[:, H:2 * H].T
        top, bot = (Wp, Wc) if i % 2 == 0 else (Wc, Wp)
        blk = jnp.zeros((2 * Hp, Hp), jnp.float32)
        blk = blk.at[:H, :H].set(top)
        blk = blk.at[Hp:Hp + H, :H].set(bot)
        wpc.append(blk)
    if not wpc:                                             # L == 1: never read
        wpc.append(jnp.zeros((2 * Hp, Hp), jnp.float32))
    w_pc = jnp.stack(wpc).astype(bf16)                      # (max(L-1,1),2Hp,Hp)

    # Output layer in VPU form.  After the last hidden layer, cur sits in
    # half 0 when L is odd and in half 1 when L is even.
    wo_prev, wo_cur = w_out[0, :H], w_out[0, H:2 * H]
    h0, h1 = (wo_cur, wo_prev) if L % 2 == 1 else (wo_prev, wo_cur)
    wo_pc = jnp.zeros((1, 2 * Hp), jnp.float32)
    wo_pc = wo_pc.at[0, :H].set(h0).at[0, Hp:Hp + H].set(h1)
    wo_x = w_out[:, 2 * H:]                                 # (1, I)
    bo = b_out[None, :]                                     # (1, 1)

    params = {"hp": Hp, "n_layers": L, "wx_all": wx_all, "bx_all": bx_all,
              "w0c": w0c, "w_pc": w_pc, "wo_pc": wo_pc, "wo_x": wo_x, "bo": bo}
    return raw, params


def reference_forward(x, raw):
    """Pure-JAX replica of the PyTorch forward (for validation)."""
    cur = x @ raw["w_in"].T + raw["b_in"]
    prev = jnp.zeros((x.shape[0], 0), jnp.float32)
    for (W, b) in raw["hidden"]:
        combined = jnp.concatenate([prev, cur, x], axis=1)
        prev = cur
        z = combined @ W.T + b
        cur = jnp.where(z >= 0, z, NEG_SLOPE * z)
    y = jnp.concatenate([prev, cur, x], axis=1) @ raw["w_out"].T + raw["b_out"]
    return jax.nn.sigmoid(y)


if __name__ == "__main__":
    key = jax.random.PRNGKey(0)
    k1, k2, k3, kx1, kx2, kx3 = jax.random.split(key, 6)

    def check(raw, params, x, name):
        out = jax.block_until_ready(skipconn_forward(x, params))
        ref = reference_forward(x, raw)
        assert out.shape == ref.shape, (name, out.shape, ref.shape)
        err = float(jnp.max(jnp.abs(out - ref)))
        # Tolerance reflects bf16 MXU operands (matching TPU default-precision
        # matmul behavior); structural bugs produce O(0.1) errors.
        assert err < 5e-3, f"{name}: max abs diff = {err}"

    # Case 1: multi-layer model (even L exercises both scratch-half parities).
    raw1, p1 = init_params(k1, hidden_size=32, num_hidden_layers=4, init_size=2)
    check(raw1, p1, jax.random.normal(kx1, (8, 2), jnp.float32), "L4")

    # Case 2: single hidden layer + batch not a multiple of the sublane tile.
    raw2, p2 = init_params(k2, hidden_size=20, num_hidden_layers=1, init_size=2)
    check(raw2, p2, jax.random.normal(kx2, (5, 2), jnp.float32), "L1")

    # Case 3: odd L > 1 and a batch large enough for a multi-step parallel grid.
    raw3, p3 = init_params(k3, hidden_size=16, num_hidden_layers=3, init_size=2)
    check(raw3, p3, jax.random.normal(kx3, (300, 2), jnp.float32), "L3/grid")

    print("KERNEL_OK")
</pallas_src>

<mosaic_0001>
module attributes {stable_mosaic.version = 11 : i64} {
  func.func @_skipconn_kernel(%arg0: i32, %arg1: memref<8x2xf32, #tpu.memory_space<vmem>>, %arg2: memref<2x640xf32, #tpu.memory_space<vmem>>, %arg3: memref<1x640xf32, #tpu.memory_space<vmem>>, %arg4: memref<128x128xbf16, #tpu.memory_space<vmem>>, %arg5: memref<3x256x128xbf16, #tpu.memory_space<vmem>>, %arg6: memref<1x256xf32, #tpu.memory_space<vmem>>, %arg7: memref<1x2xf32, #tpu.memory_space<vmem>>, %arg8: memref<1x1xf32, #tpu.memory_space<vmem>>, %arg9: memref<8x1xf32, #tpu.memory_space<vmem>>, %arg10: memref<8x256xbf16, #tpu.memory_space<vmem>>) attributes {dimension_semantics = [#tpu.dimension_semantics<parallel>], iteration_bounds = array<i64: 1>, scalar_prefetch = 0 : i64, scratch_operands = 1 : i64, tpu.core_type = #tpu.core_type<tc>, window_params = [{transform_indices = @transform_0, window_bounds = array<i64: 8, 2>}, {pipeline_mode = #tpu.pipeline_mode<synchronous>, transform_indices = @transform_1, window_bounds = array<i64: 2, 640>}, {pipeline_mode = #tpu.pipeline_mode<synchronous>, transform_indices = @transform_2, window_bounds = array<i64: 1, 640>}, {pipeline_mode = #tpu.pipeline_mode<synchronous>, transform_indices = @transform_3, window_bounds = array<i64: 128, 128>}, {pipeline_mode = #tpu.pipeline_mode<synchronous>, transform_indices = @transform_4, window_bounds = array<i64: 3, 256, 128>}, {pipeline_mode = #tpu.pipeline_mode<synchronous>, transform_indices = @transform_5, window_bounds = array<i64: 1, 256>}, {pipeline_mode = #tpu.pipeline_mode<synchronous>, transform_indices = @transform_6, window_bounds = array<i64: 1, 2>}, {pipeline_mode = #tpu.pipeline_mode<synchronous>, transform_indices = @transform_7, window_bounds = array<i64: 1, 1>}, {transform_indices = @transform_8, window_bounds = array<i64: 8, 1>}]} {
    %c0 = arith.constant 0 : index
    %c0_0 = arith.constant 0 : index
    %0 = vector.load %arg1[%c0, %c0_0] : memref<8x2xf32, #tpu.memory_space<vmem>>, vector<8x2xf32>
    %c0_1 = arith.constant 0 : index
    %c0_2 = arith.constant 0 : index
    %1 = vector.load %arg2[%c0_1, %c0_2] : memref<2x640xf32, #tpu.memory_space<vmem>>, vector<2x640xf32>
    %2 = vector.extract_strided_slice %0 {offsets = [0, 0], sizes = [8, 1], strides = [1, 1]} : vector<8x2xf32> to vector<8x1xf32>
    %3 = vector.extract_strided_slice %1 {offsets = [0, 0], sizes = [1, 640], strides = [1, 1]} : vector<2x640xf32> to vector<1x640xf32>
    %4 = vector.broadcast %2 : vector<8x1xf32> to vector<8x640xf32>
    %5 = vector.broadcast %3 : vector<1x640xf32> to vector<8x640xf32>
    %6 = arith.mulf %4, %5 : vector<8x640xf32>
    %c0_3 = arith.constant 0 : index
    %c0_4 = arith.constant 0 : index
    %7 = vector.load %arg3[%c0_3, %c0_4] : memref<1x640xf32, #tpu.memory_space<vmem>>, vector<1x640xf32>
    %8 = vector.broadcast %7 : vector<1x640xf32> to vector<8x640xf32>
    %9 = arith.addf %6, %8 : vector<8x640xf32>
    %10 = vector.extract_strided_slice %0 {offsets = [0, 1], sizes = [8, 1], strides = [1, 1]} : vector<8x2xf32> to vector<8x1xf32>
    %11 = vector.extract_strided_slice %1 {offsets = [1, 0], sizes = [1, 640], strides = [1, 1]} : vector<2x640xf32> to vector<1x640xf32>
    %12 = vector.broadcast %10 : vector<8x1xf32> to vector<8x640xf32>
    %13 = vector.broadcast %11 : vector<1x640xf32> to vector<8x640xf32>
    %14 = arith.mulf %12, %13 : vector<8x640xf32>
    %15 = arith.addf %9, %14 : vector<8x640xf32>
    %16 = vector.extract_strided_slice %15 {offsets = [0, 0], sizes = [8, 128], strides = [1, 1]} : vector<8x640xf32> to vector<8x128xf32>
    %17 = arith.truncf %16 : vector<8x128xf32> to vector<8x128xbf16>
    %c0_5 = arith.constant 0 : index
    %c0_6 = arith.constant 0 : index
    %18 = vector.load %arg4[%c0_5, %c0_6] : memref<128x128xbf16, #tpu.memory_space<vmem>>, vector<128x128xbf16>
    %cst = arith.constant dense<0.000000e+00> : vector<8x128xf32>
    %19 = tpu.matmul %17, %18, %cst {dimension_numbers = #tpu.dot_dimension_numbers<[1], [0], [0], [1], [0, 0, 1, 1], [], []>} : vector<8x128xbf16>, vector<128x128xbf16>, vector<8x128xf32> -> vector<8x128xf32>
    %20 = vector.extract_strided_slice %15 {offsets = [0, 128], sizes = [8, 128], strides = [1, 1]} : vector<8x640xf32> to vector<8x128xf32>
    %21 = arith.addf %19, %20 : vector<8x128xf32>
    %cst_7 = arith.constant 0.000000e+00 : f32
    %22 = vector.broadcast %cst_7 : f32 to vector<8x128xf32>
    %23 = arith.cmpf oge, %21, %22 : vector<8x128xf32>
    %cst_8 = arith.constant 0.00999999977 : f32
    %24 = vector.broadcast %cst_8 : f32 to vector<8x128xf32>
    %25 = arith.mulf %24, %21 : vector<8x128xf32>
    %26 = arith.select %23, %21, %25 : vector<8x128xi1>, vector<8x128xf32>
    %27 = arith.truncf %16 : vector<8x128xf32> to vector<8x128xbf16>
    %c0_9 = arith.constant 0 : index
    %c128 = arith.constant 128 : index
    %28 = vector.load %arg10[%c0_9, %c128] : memref<8x256xbf16, #tpu.memory_space<vmem>>, vector<8x128xbf16>
    tpu.vector_store %arg10[%c0_9, %c128], %27 {strides = array<i32>} : memref<8x256xbf16, #tpu.memory_space<vmem>>, vector<8x128xbf16>,
    %29 = arith.truncf %26 : vector<8x128xf32> to vector<8x128xbf16>
    %c0_10 = arith.constant 0 : index
    %c0_11 = arith.constant 0 : index
    %30 = vector.load %arg10[%c0_10, %c0_11] : memref<8x256xbf16, #tpu.memory_space<vmem>>, vector<8x128xbf16>
    tpu.vector_store %arg10[%c0_10, %c0_11], %29 {strides = array<i32>} : memref<8x256xbf16, #tpu.memory_space<vmem>>, vector<8x128xbf16>,
    %c0_12 = arith.constant 0 : index
    %c0_13 = arith.constant 0 : index
    %31 = vector.load %arg10[%c0_12, %c0_13] : memref<8x256xbf16, #tpu.memory_space<vmem>>, vector<8x256xbf16>
    %c0_14 = arith.constant 0 : index
    %c0_15 = arith.constant 0 : index
    %c0_16 = arith.constant 0 : index
    %32 = vector.load %arg5[%c0_14, %c0_15, %c0_16] : memref<3x256x128xbf16, #tpu.memory_space<vmem>>, vector<1x256x128xbf16>
    %33 = vector.shape_cast %32 : vector<1x256x128xbf16> to vector<256x128xbf16>
    %cst_17 = arith.constant dense<0.000000e+00> : vector<8x128xf32>
    %34 = tpu.matmul %31, %33, %cst_17 {dimension_numbers = #tpu.dot_dimension_numbers<[1], [0], [0], [1], [0, 0, 1, 1], [], []>} : vector<8x256xbf16>, vector<256x128xbf16>, vector<8x128xf32> -> vector<8x128xf32>
    %35 = vector.extract_strided_slice %15 {offsets = [0, 256], sizes = [8, 128], strides = [1, 1]} : vector<8x640xf32> to vector<8x128xf32>
    %36 = arith.addf %34, %35 : vector<8x128xf32>
    %cst_18 = arith.constant 0.000000e+00 : f32
    %37 = vector.broadcast %cst_18 : f32 to vector<8x128xf32>
    %38 = arith.cmpf oge, %36, %37 : vector<8x128xf32>
    %cst_19 = arith.constant 0.00999999977 : f32
    %39 = vector.broadcast %cst_19 : f32 to vector<8x128xf32>
    %40 = arith.mulf %39, %36 : vector<8x128xf32>
    %41 = arith.select %38, %36, %40 : vector<8x128xi1>, vector<8x128xf32>
    %42 = arith.truncf %41 : vector<8x128xf32> to vector<8x128xbf16>
    %c0_20 = arith.constant 0 : index
    %c128_21 = arith.constant 128 : index
    %43 = vector.load %arg10[%c0_20, %c128_21] : memref<8x256xbf16, #tpu.memory_space<vmem>>, vector<8x128xbf16>
    tpu.vector_store %arg10[%c0_20, %c128_21], %42 {strides = array<i32>} : memref<8x256xbf16, #tpu.memory_space<vmem>>, vector<8x128xbf16>,
    %c0_22 = arith.constant 0 : index
    %c0_23 = arith.constant 0 : index
    %44 = vector.load %arg10[%c0_22, %c0_23] : memref<8x256xbf16, #tpu.memory_space<vmem>>, vector<8x256xbf16>
    %c1 = arith.constant 1 : index
    %c0_24 = arith.constant 0 : index
    %c0_25 = arith.constant 0 : index
    %45 = vector.load %arg5[%c1, %c0_24, %c0_25] : memref<3x256x128xbf16, #tpu.memory_space<vmem>>, vector<1x256x128xbf16>
    %46 = vector.shape_cast %45 : vector<1x256x128xbf16> to vector<256x128xbf16>
    %cst_26 = arith.constant dense<0.000000e+00> : vector<8x128xf32>
    %47 = tpu.matmul %44, %46, %cst_26 {dimension_numbers = #tpu.dot_dimension_numbers<[1], [0], [0], [1], [0, 0, 1, 1], [], []>} : vector<8x256xbf16>, vector<256x128xbf16>, vector<8x128xf32> -> vector<8x128xf32>
    %48 = vector.extract_strided_slice %15 {offsets = [0, 384], sizes = [8, 128], strides = [1, 1]} : vector<8x640xf32> to vector<8x128xf32>
    %49 = arith.addf %47, %48 : vector<8x128xf32>
    %cst_27 = arith.constant 0.000000e+00 : f32
    %50 = vector.broadcast %cst_27 : f32 to vector<8x128xf32>
    %51 = arith.cmpf oge, %49, %50 : vector<8x128xf32>
    %cst_28 = arith.constant 0.00999999977 : f32
    %52 = vector.broadcast %cst_28 : f32 to vector<8x128xf32>
    %53 = arith.mulf %52, %49 : vector<8x128xf32>
    %54 = arith.select %51, %49, %53 : vector<8x128xi1>, vector<8x128xf32>
    %55 = arith.truncf %54 : vector<8x128xf32> to vector<8x128xbf16>
    %c0_29 = arith.constant 0 : index
    %c0_30 = arith.constant 0 : index
    %56 = vector.load %arg10[%c0_29, %c0_30] : memref<8x256xbf16, #tpu.memory_space<vmem>>, vector<8x128xbf16>
    tpu.vector_store %arg10[%c0_29, %c0_30], %55 {strides = array<i32>} : memref<8x256xbf16, #tpu.memory_space<vmem>>, vector<8x128xbf16>,
    %c0_31 = arith.constant 0 : index
    %c0_32 = arith.constant 0 : index
    %57 = vector.load %arg10[%c0_31, %c0_32] : memref<8x256xbf16, #tpu.memory_space<vmem>>, vector<8x256xbf16>
    %c2 = arith.constant 2 : index
    %c0_33 = arith.constant 0 : index
    %c0_34 = arith.constant 0 : index
    %58 = vector.load %arg5[%c2, %c0_33, %c0_34] : memref<3x256x128xbf16, #tpu.memory_space<vmem>>, vector<1x256x128xbf16>
    %59 = vector.shape_cast %58 : vector<1x256x128xbf16> to vector<256x128xbf16>
    %cst_35 = arith.constant dense<0.000000e+00> : vector<8x128xf32>
    %60 = tpu.matmul %57, %59, %cst_35 {dimension_numbers = #tpu.dot_dimension_numbers<[1], [0], [0], [1], [0, 0, 1, 1], [], []>} : vector<8x256xbf16>, vector<256x128xbf16>, vector<8x128xf32> -> vector<8x128xf32>
    %61 = vector.extract_strided_slice %15 {offsets = [0, 512], sizes = [8, 128], strides = [1, 1]} : vector<8x640xf32> to vector<8x128xf32>
    %62 = arith.addf %60, %61 : vector<8x128xf32>
    %cst_36 = arith.constant 0.000000e+00 : f32
    %63 = vector.broadcast %cst_36 : f32 to vector<8x128xf32>
    %64 = arith.cmpf oge, %62, %63 : vector<8x128xf32>
    %cst_37 = arith.constant 0.00999999977 : f32
    %65 = vector.broadcast %cst_37 : f32 to vector<8x128xf32>
    %66 = arith.mulf %65, %62 : vector<8x128xf32>
    %67 = arith.select %64, %62, %66 : vector<8x128xi1>, vector<8x128xf32>
    %68 = arith.truncf %67 : vector<8x128xf32> to vector<8x128xbf16>
    %c0_38 = arith.constant 0 : index
    %c128_39 = arith.constant 128 : index
    %69 = vector.load %arg10[%c0_38, %c128_39] : memref<8x256xbf16, #tpu.memory_space<vmem>>, vector<8x128xbf16>
    tpu.vector_store %arg10[%c0_38, %c128_39], %68 {strides = array<i32>} : memref<8x256xbf16, #tpu.memory_space<vmem>>, vector<8x128xbf16>,
    %c0_40 = arith.constant 0 : index
    %c0_41 = arith.constant 0 : index
    %70 = vector.load %arg10[%c0_40, %c0_41] : memref<8x256xbf16, #tpu.memory_space<vmem>>, vector<8x256xbf16>
    %71 = arith.extf %70 : vector<8x256xbf16> to vector<8x256xf32>
    %c0_42 = arith.constant 0 : index
    %c0_43 = arith.constant 0 : index
    %72 = vector.load %arg6[%c0_42, %c0_43] : memref<1x256xf32, #tpu.memory_space<vmem>>, vector<1x256xf32>
    %73 = vector.broadcast %72 : vector<1x256xf32> to vector<8x256xf32>
    %74 = arith.mulf %71, %73 : vector<8x256xf32>
    %cst_44 = arith.constant dense<0.000000e+00> : vector<8xf32>
    %75 = vector.multi_reduction <add>, %74, %cst_44 [1] : vector<8x256xf32> to vector<8xf32>
    %76 = vector.shape_cast %75 : vector<8xf32> to vector<8x1xf32>
    %c0_45 = arith.constant 0 : index
    %c0_46 = arith.constant 0 : index
    %77 = vector.load %arg7[%c0_45, %c0_46] : memref<1x2xf32, #tpu.memory_space<vmem>>, vector<1x2xf32>
    %78 = vector.broadcast %77 : vector<1x2xf32> to vector<8x2xf32>
    %79 = arith.mulf %0, %78 : vector<8x2xf32>
    %cst_47 = arith.constant dense<0.000000e+00> : vector<8xf32>
    %80 = vector.multi_reduction <add>, %79, %cst_47 [1] : vector<8x2xf32> to vector<8xf32>
    %81 = vector.shape_cast %80 : vector<8xf32> to vector<8x1xf32>
    %82 = arith.addf %76, %81 : vector<8x1xf32>
    %c0_48 = arith.constant 0 : index
    %c0_49 = arith.constant 0 : index
    %83 = vector.load %arg8[%c0_48, %c0_49] : memref<1x1xf32, #tpu.memory_space<vmem>>, vector<1x1xf32>
    %84 = vector.broadcast %83 : vector<1x1xf32> to vector<8x1xf32>
    %85 = arith.addf %82, %84 : vector<8x1xf32>
    %86 = arith.negf %85 : vector<8x1xf32>
    %87 = math.exp %86 : vector<8x1xf32>
    %cst_50 = arith.constant 1.000000e+00 : f32
    %88 = vector.broadcast %cst_50 : f32 to vector<8x1xf32>
    %89 = arith.addf %88, %87 : vector<8x1xf32>
    %90 = arith.divf %88, %89 : vector<8x1xf32>
    %c0_51 = arith.constant 0 : index
    %c0_52 = arith.constant 0 : index
    %91 = vector.load %arg9[%c0_51, %c0_52] : memref<8x1xf32, #tpu.memory_space<vmem>>, vector<8x1xf32>
    tpu.vector_store %arg9[%c0_51, %c0_52], %90 {strides = array<i32>} : memref<8x1xf32, #tpu.memory_space<vmem>>, vector<8x1xf32>,
    return
  }
  func.func @transform_0(%arg0: i32) -> (i32, i32) {
    %c0_i32 = arith.constant 0 : i32
    %c0_i32_0 = arith.constant 0 : i32
    return %arg0, %c0_i32 : i32, i32
  }
  func.func @transform_1(%arg0: i32) -> (i32, i32) {
    %c0_i32 = arith.constant 0 : i32
    %c0_i32_0 = arith.constant 0 : i32
    %c0_i32_1 = arith.constant 0 : i32
    return %c0_i32, %c0_i32_0 : i32, i32
  }
  func.func @transform_2(%arg0: i32) -> (i32, i32) {
    %c0_i32 = arith.constant 0 : i32
    %c0_i32_0 = arith.constant 0 : i32
    %c0_i32_1 = arith.constant 0 : i32
    return %c0_i32, %c0_i32_0 : i32, i32
  }
  func.func @transform_3(%arg0: i32) -> (i32, i32) {
    %c0_i32 = arith.constant 0 : i32
    %c0_i32_0 = arith.constant 0 : i32
    %c0_i32_1 = arith.constant 0 : i32
    return %c0_i32, %c0_i32_0 : i32, i32
  }
  func.func @transform_4(%arg0: i32) -> (i32, i32, i32) {
    %c0_i32 = arith.constant 0 : i32
    %c0_i32_0 = arith.constant 0 : i32
    %c0_i32_1 = arith.constant 0 : i32
    %c0_i32_2 = arith.constant 0 : i32
    return %c0_i32, %c0_i32_0, %c0_i32_1 : i32, i32, i32
  }
  func.func @transform_5(%arg0: i32) -> (i32, i32) {
    %c0_i32 = arith.constant 0 : i32
    %c0_i32_0 = arith.constant 0 : i32
    %c0_i32_1 = arith.constant 0 : i32
    return %c0_i32, %c0_i32_0 : i32, i32
  }
  func.func @transform_6(%arg0: i32) -> (i32, i32) {
    %c0_i32 = arith.constant 0 : i32
    %c0_i32_0 = arith.constant 0 : i32
    %c0_i32_1 = arith.constant 0 : i32
    return %c0_i32, %c0_i32_0 : i32, i32
  }
  func.func @transform_7(%arg0: i32) -> (i32, i32) {
    %c0_i32 = arith.constant 0 : i32
    %c0_i32_0 = arith.constant 0 : i32
    %c0_i32_1 = arith.constant 0 : i32
    return %c0_i32, %c0_i32_0 : i32, i32
  }
  func.func @transform_8(%arg0: i32) -> (i32, i32) {
    %c0_i32 = arith.constant 0 : i32
    %c0_i32_0 = arith.constant 0 : i32
    return %arg0, %c0_i32 : i32, i32
  }
}

</mosaic_0001>

<bundles_post_ra>
// kernel: tpu_custom_call.1
= control target key start
LH: loop header
LB: loop body
LE: loop exit
PB: predicated region body
PF: predicated region fallthrough
CT: control target
= control target key end

     0   :  { %s1352_s0 = inlined_call_operand.vmem [shape: f32[8,2], index: 0, kind: input, shape index: {}]   ;;  %s1353_s1 = inlined_call_operand.vmem [shape: f32[2,640], index: 1, kind: input, shape index: {}]   ;;  %s1354_s2 = inlined_call_operand.vmem [shape: f32[1,640], index: 2, kind: input, shape index: {}]   ;;  %s1355_s3 = inlined_call_operand.hbm [shape: bf16[128,128], index: 3, kind: input, shape index: {}]   ;;  %s1356_s4 = inlined_call_operand.hbm [shape: bf16[3,256,128], index: 4, kind: input, shape index: {}]   ;;  %s1357_s5 = inlined_call_operand.vmem [shape: f32[1,256], index: 5, kind: input, shape index: {}]   ;;  %s1358_s6 = inlined_call_operand.vmem [shape: f32[1,2], index: 6, kind: input, shape index: {}]   ;;  %s1359_s7 = inlined_call_operand.<no memory space> [shape: f32[1,1], index: 7, kind: input, shape index: {}]   ;;  %s1360_s8 = inlined_call_operand.vmem [shape: f32[8,1], index: 8, kind: output, shape index: {}]  }
   0x1   :  { %v13_v0 = vstv %s1359_s7 }
   0x2   :  { %14 = vst [vmem:[#allocation3] sm:$0x1] %v13_v0 }
   0x3   :  { %15 = vsyncpa [#allocation5], 0 }
   0x4   :  { %16 = vsyncpa [#allocation7], 0  ;;  %s1207_s29 = smov [#allocation4]  }
   0x5   :  { %s28_s30 = sshll.u32 %s1207_s29, 4  ;;  %s29_s30 = int_to_ptr.vmem [resolvable:$true] %s28_s30 }
   0x6   :  { %s1171_s9 = scalar_lea.vmem %s29_s30, 1024  ;;  %p1176_p1 = scmp.lt.s32.totalorder %s29_s30, %s29_s30 }
   0x7   :  { %p1172_p0 = scmp.ne.s32.totalorder %s29_s30, %s1171_s9  ;;  %p1177_p2 = scmp.lt.s32.totalorder %s1171_s9, %s1171_s9 }
   0x9   :  { %p1178_p3 = por %p1177_p2, %p1176_p1 }
   0xb   :  { %p1179_p4 = pnand %p1178_p3, %p1172_p0 }
   0xd   :  { %1182 = shalt.err (!%p1179_p4)
}
   0xe   :  { %s1208_s10 = smov 64   ;;  %s1209_s11 = smov 4  }
   0xf   :  { %34 = dma.hbm_to_vmem [thread:$0]  %s1355_s3, 1024, %s29_s30, [#allocation5], %s1208_s10, %s1208_s10, %s1209_s11  }
  0x10   :  { %s1210_s7 = smov [#allocation6]  }
  0x11   :  { %s40_s14 = sshll.u32 %s1210_s7, 4  ;;  %s41_s14 = int_to_ptr.vmem [resolvable:$true] %s40_s14 }
  0x12   :  { %s1191_s15 = scalar_lea.vmem %s41_s14, 6144  ;;  %p1196_p6 = scmp.lt.s32.totalorder %s41_s14, %s41_s14 }
  0x13   :  { %p1192_p5 = scmp.ne.s32.totalorder %s41_s14, %s1191_s15  ;;  %p1197_p7 = scmp.lt.s32.totalorder %s1191_s15, %s1191_s15 }
  0x15   :  { %p1198_p8 = por %p1197_p7, %p1196_p6 }
  0x17   :  { %p1199_p9 = pnand %p1198_p8, %p1192_p5 }
  0x19   :  { %1202 = shalt.err (!%p1199_p9)
}
  0x1a   :  { %46 = dma.hbm_to_vmem [thread:$0]  %s1356_s4, 6144, %s41_s14, [#allocation7], %s1208_s10, %s1208_s10, %s1209_s11  }
  0x1b   :  { %1203 = dma.done.wait [#allocation5], 1024  }
  0x1c   :  { %1204 = vsyncadd [#allocation5], 4294966272 }
  0x1d   :  { %1205 = dma.done.wait [#allocation7], 6144  }
  0x1e   :  { %1206 = vsyncadd [#allocation7], 4294961152  ;;  %v70_v1 = vlaneseq  ;;  %v1211_v2 = vmov 0   ;;  %v1212_v3 = vmov 0.0   ;;  %v1276_v7 = vld [vmem:[%s1352_s0] sm:$0xff]  ;;  %vm1213_vm0 = vmmov 0  }
  0x1f   :  { %1095 = vset.pattern.permute.xlu0 %v1211_v2  ;;  %1067 = vmatprep.subr.bf16.mxu0 %v1212_v3  ;;  %v1097_v9 = vld [vmem:[#allocation4 + $0x38] sm:$0xff]   ;;  %v1098_v12 = vld [vmem:[#allocation4 + $0x30] sm:$0xff]   ;;  %v1214_v14 = vmov 1   ;;  %v1099_v18 = vld [vmem:[#allocation4 + $0x28] sm:$0xff]   ;;  %vm895_vm5 = vcmask 15360   ;;  %vm914_vm6 = vcmask 7168  }
  0x20   :  { %v1269_v4 = vshrl.u32 %v70_v1, 7  ;;  %65 = vperm.xlu0 %1095, %v1276_v7   ;;  %1068 = vmatpush3.bf16.msra.mxu0 %v1097_v9  ;;  %v61_v15 = vld [vmem:[%s1353_s1] sm:$0xff]  ;;  %v1100_v23 = vld [vmem:[#allocation4 + $0x20] sm:$0xff]   ;;  %v1109_v33 = vld [vmem:[#allocation6 + $0x68] sm:$0xff]  }
  0x21   :  { %1083 = vmatprep.mubr.msk.bf16.mxu0 %vm1213_vm0, %v1212_v3  ;;  %1069 = vmatprep.subr.bf16.mxu0 %v1212_v3  ;;  %v1296_v24 = vld [vmem:[%s1354_s2] sm:$0x1f]  ;;  %v1110_v34 = vld [vmem:[#allocation6 + $0x28] sm:$0xff]   ;;  %v1111_v35 = vld [vmem:[#allocation6 + $0x60] sm:$0xff]  }
  0x22   :  { %v166_v5 = vsub.s32 5, %v1269_v4  ;;  %v170_v6 = vsub.s32 7, %v1269_v4  ;;  %v76_v8 = vsub.s32 2, %v1269_v4  ;;  %v136_v10 = vsub.s32 3, %v1269_v4  ;;  %v1105_v25 = vld [vmem:[#allocation6 + $0x78] sm:$0xff]   ;;  %v1107_v29 = vld [vmem:[#allocation6 + $0x70] sm:$0xff]  }
  0x23   :  { %v80_v11 = vsub.s32 4, %v1269_v4  ;;  %v84_v13 = vsub.s32 6, %v1269_v4  ;;  %v1106_v26 = vld [vmem:[#allocation6 + $0x38] sm:$0xff]   ;;  %1001 = vmatprep.subr.bf16.mxu1 %v1105_v25  ;;  %v1108_v32 = vld [vmem:[#allocation6 + $0x30] sm:$0xff]   ;;  %v1103_v37 = vld [vmem:[#allocation4 + $0x8] sm:$0xff]   ;;  %v1302_v39 = vsub.s32 0, %v1269_v4 }
  0x24   :  { %1096 = vset.pattern.permute.xlu0 %v1214_v14  ;;  %v1287_v16 = vrot.slane %v61_v15, %v166_v5  ;;  %v1289_v17 = vrot.slane %v61_v15, %v170_v6  ;;  %1070 = vmatpush3.bf16.msra.mxu0 %v1098_v12  ;;  %v77_v19 = vrot.slane %v61_v15, %v76_v8  ;;  %v1101_v31 = vld [vmem:[#allocation4 + $0x18] sm:$0xff]   ;;  %v1102_v36 = vld [vmem:[#allocation4 + $0x10] sm:$0xff]   ;;  %v1104_v38 = vld [vmem:[#allocation4] sm:$0xff]   ;;  %v1308_v41 = vsub.s32 1, %v1269_v4 }
  0x25   :  { %153 = vperm.xlu0 %1096, %v1276_v7   ;;  %v1291_v20 = vrot.slane %v61_v15, %v136_v10  ;;  %v81_v21 = vrot.slane %v61_v15, %v80_v11  ;;  %v85_v22 = vrot.slane %v61_v15, %v84_v13  ;;  %1071 = vmatprep.subr.bf16.mxu0 %v1212_v3  ;;  %v62_v40 = vld [vmem:[%s1353_s1 + $0x8] sm:$0x3] }
  0x26   :  { %v133_v27 = vrot.slane %v1296_v24, %v76_v8  ;;  %v137_v28 = vrot.slane %v1296_v24, %v136_v10  ;;  %v141_v30 = vrot.slane %v1296_v24, %v80_v11  ;;  %1002 = vmatpush3.bf16.msra.mxu1 %v1106_v26  ;;  %v73_v42 = vrot.slane %v61_v15, %v1302_v39  ;;  %v1119_v25 = vld [vmem:[#allocation6 + $0x40] sm:$0xff]  }
  0x27   :  { %1003 = vmatprep.subr.bf16.mxu1 %v1107_v29  ;;  %v89_v43 = vrot.slane %v62_v40, %v1302_v39  ;;  %v159_v44 = vrot.slane %v61_v15, %v1308_v41  ;;  %v102_v46 = vrot.slane %v77_v19, %v1302_v39  ;;  %v106_v47 = vrot.slane %v81_v21, %v1302_v39  ;;  %v1113_v19 = vld [vmem:[#allocation6 + $0x58] sm:$0xff]   ;;  %v1115_v21 = vld [vmem:[#allocation6 + $0x50] sm:$0xff]   ;;  %v1120_v26 = vld [vmem:[#allocation6] sm:$0xff]  }
  0x28   :  { %1072 = vmatpush3.bf16.msra.mxu0 %v1099_v18  ;;  %v98_v45 = vrot.slane %v73_v42, %v1302_v39  ;;  %v110_v48 = vrot.slane %v85_v22, %v1302_v39  ;;  %v175_v49 = vrot.slane %v62_v40, %v1308_v41  ;;  %v129_v51 = vrot.slane %v1296_v24, %v1308_v41  ;;  %v1112_v18 = vld [vmem:[#allocation6 + $0x20] sm:$0xff]   ;;  %v1116_v22 = vld [vmem:[#allocation6 + $0x10] sm:$0xff]  }
  0x29   :  { %1073 = vmatprep.subr.bf16.mxu0 %v1212_v3  ;;  %v114_v50 = vrot.slane %v89_v43, %v1302_v39  ;;  %v184_v53 = vrot.slane %v159_v44, %v1308_v41  ;;  %v125_v54 = vrot.slane %v1296_v24, %v1302_v39  ;;  %v192_v59 = vrot.slane %v1287_v16, %v1308_v41  ;;  %v1118_v24 = vld [vmem:[#allocation6 + $0x8] sm:$0xff]   ;;  %v1123_v29 = vld [vmem:[#allocation6 + $0xf0] sm:$0xff]   ;;  %v1127_v44 = vld [vmem:[#allocation6 + $0xe0] sm:$0xff]  }
  0x2a   :  { %1004 = vmatpush3.bf16.msra.mxu1 %v1108_v32  ;;  %v196_v60 = vrot.slane %v1289_v17, %v1308_v41  ;;  %v200_v61 = vrot.slane %v175_v49, %v1308_v41  ;;  %v188_v0 = vrot.slane %v1291_v20, %v1308_v41  ;;  %v1114_v20 = vld [vmem:[#allocation6 + $0x18] sm:$0xff]   ;;  %v1126_v43 = vld [vmem:[#allocation6 + $0xa8] sm:$0xff]   ;;  %v1132_v49 = vld [vmem:[#allocation6 + $0x90] sm:$0xff]  }
  0x2b   :  { %1005 = vmatprep.subr.bf16.mxu1 %v1109_v33 }
  0x2c   :  { %1074 = vmatpush3.bf16.msra.mxu0 %v1100_v23  ;;  %v1117_v23 = vld [vmem:[#allocation6 + $0x48] sm:$0xff]  }
  0x2d   :  { %1075 = vmatprep.subr.bf16.mxu0 %v1212_v3 }
  0x2e   :  { %1006 = vmatpush3.bf16.msra.mxu1 %v1110_v34 }
  0x2f   :  { %1007 = vmatprep.subr.bf16.mxu1 %v1111_v35 }
  0x30   :  { %1076 = vmatpush3.bf16.msra.mxu0 %v1101_v31  ;;  %v1125_v31 = vld [vmem:[#allocation6 + $0xe8] sm:$0xff]  }
  0x31   :  { %1077 = vmatprep.subr.bf16.mxu0 %v1212_v3 }
  0x32   :  { %1008 = vmatpush3.bf16.msra.mxu1 %v1112_v18  ;;  %v1152_v18 = vld [vmem:[#allocation6 + $0x108] sm:$0xff]  }
  0x33   :  { %1009 = vmatprep.subr.bf16.mxu1 %v1113_v19  ;;  %v1153_v19 = vld [vmem:[#allocation6 + $0x140] sm:$0xff]  }
  0x34   :  { %1078 = vmatpush3.bf16.msra.mxu0 %v1102_v36 }
  0x35   :  { %1079 = vmatprep.subr.bf16.mxu0 %v1212_v3 }
  0x36   :  { %1010 = vmatpush3.bf16.msra.mxu1 %v1114_v20  ;;  %v1154_v20 = vld [vmem:[#allocation6 + $0x100] sm:$0xff]  }
  0x37   :  { %1011 = vmatprep.subr.bf16.mxu1 %v1115_v21 }
  0x38   :  { %1080 = vmatpush3.bf16.msra.mxu0 %v1103_v37 }
  0x39   :  { %1081 = vmatprep.subr.bf16.mxu0 %v1212_v3 }
  0x3a   :  { %1012 = vmatpush3.bf16.msra.mxu1 %v1116_v22 }
  0x3b   :  { %1013 = vmatprep.subr.bf16.mxu1 %v1117_v23 }
  0x3c   :  { %1082 = vmatpush3.bf16.msra.mxu0 %v1104_v38 }
  0x3e   :  { %1014 = vmatpush3.bf16.msra.mxu1 %v1118_v24 }
  0x3f   :  { %1015 = vmatprep.subr.bf16.mxu1 %v1119_v25 }
  0x42   :  { %1016 = vmatpush3.bf16.msra.mxu1 %v1120_v26 }
  0x9b   :  { %v66_v52 = vpop.permute.xlu0 %65 }
  0x9c   :  { %v115_v55 = vmul.f32 %v98_v45, %v66_v52  ;;  %v116_v56 = vmul.f32 %v102_v46, %v66_v52  ;;  %v117_v57 = vmul.f32 %v106_v47, %v66_v52  ;;  %v118_v58 = vmul.f32 %v110_v48, %v66_v52  ;;  %v1128_v45 = vld [vmem:[#allocation6 + $0xa0] sm:$0xff]   ;;  %v1129_v46 = vld [vmem:[#allocation6 + $0xd8] sm:$0xff]   ;;  %v1131_v48 = vld [vmem:[#allocation6 + $0xd0] sm:$0xff]  }
  0x9d   :  { %v119_v62 = vmul.f32 %v114_v50, %v66_v52  ;;  %v1130_v47 = vld [vmem:[#allocation6 + $0x98] sm:$0xff]   ;;  %v1133_v50 = vld [vmem:[#allocation6 + $0xc8] sm:$0xff]   ;;  %v1135_v52 = vld [vmem:[#allocation6 + $0xc0] sm:$0xff]  }
  0x9e   :  { %v148_v63 = vadd.f32 %v129_v51, %v116_v56  ;;  %v149_v1 = vadd.f32 %v133_v27, %v117_v57  ;;  %v150_v2 = vadd.f32 %v137_v28, %v118_v58  ;;  %v147_v5 = vadd.f32 %v125_v54, %v115_v55  ;;  %v1121_v27 = vld [vmem:[#allocation6 + $0xf8] sm:$0xff]   ;;  %v1134_v51 = vld [vmem:[#allocation6 + $0x88] sm:$0xff]   ;;  %v1141_v56 = vld [vmem:[#allocation6 + $0x170] sm:$0xff]  }
  0x9f   :  { %v151_v3 = vadd.f32 %v141_v30, %v119_v62  ;;  %v1122_v28 = vld [vmem:[#allocation6 + $0xb8] sm:$0xff]   ;;  %1023 = vmatprep.subr.bf16.mxu0 %v1121_v27  ;;  %v1124_v30 = vld [vmem:[#allocation6 + $0xb0] sm:$0xff]   ;;  %v1143_v58 = vld [vmem:[#allocation6 + $0x168] sm:$0xff]  }
  0xa0   :  { %v154_v4 = vpop.permute.xlu0 %153  ;;  %v1139_v54 = vld [vmem:[#allocation6 + $0x178] sm:$0xff]   ;;  %v1142_v57 = vld [vmem:[#allocation6 + $0x130] sm:$0xff]  }
  0xa1   :  { %v201_v6 = vmul.f32 %v184_v53, %v154_v4  ;;  %v203_v8 = vmul.f32 %v192_v59, %v154_v4  ;;  %v204_v9 = vmul.f32 %v196_v60, %v154_v4  ;;  %v205_v10 = vmul.f32 %v200_v61, %v154_v4  ;;  %v1136_v53 = vld [vmem:[#allocation6 + $0x80] sm:$0xff]   ;;  %v1140_v55 = vld [vmem:[#allocation6 + $0x138] sm:$0xff]   ;;  %1045 = vmatprep.subr.bf16.mxu1 %v1139_v54 }
  0xa2   :  { %v202_v11 = vmul.f32 %v188_v0, %v154_v4 }
  0xa3   :  { %v206_v12 = vadd.f32 %v201_v6, %v147_v5  ;;  %v1331_v13 = vadd.f32 %v203_v8, %v149_v1  ;;  %v1333_v14 = vadd.f32 %v204_v9, %v150_v2  ;;  %v1335_v15 = vadd.f32 %v205_v10, %v151_v3  ;;  %v1144_v8 = vld [vmem:[#allocation6 + $0x128] sm:$0xff]   ;;  %v1145_v9 = vld [vmem:[#allocation6 + $0x160] sm:$0xff]  }
  0xa4   :  { %v207_v16 = vadd.f32 %v202_v11, %v148_v63  ;;  %v1146_v10 = vld [vmem:[#allocation6 + $0x120] sm:$0xff]   ;;  %v1147_v11 = vld [vmem:[#allocation6 + $0x158] sm:$0xff]  }
  0xa5   :  { %v211_v17 = vpack.c.bf16 %v206_v12, %v206_v12 }
  0xa7   :  { %1084 = vmatmul.mubr.bf16.vlgmr.msra.gmra.mxu0 %v211_v17  ;;  %490 = vmatprep.mubr.bf16.mxu1 %v211_v17  ;;  %v1151_v17 = vld [vmem:[#allocation6 + $0x148] sm:$0xff]  }
  0xa8   :  { %1024 = vmatpush3.bf16.msra.mxu0 %v1122_v28 }
  0xa9   :  { %1025 = vmatprep.subr.bf16.mxu0 %v1123_v29 }
  0xac   :  { %1026 = vmatpush3.bf16.msra.mxu0 %v1124_v30 }
  0xad   :  { %1027 = vmatprep.subr.bf16.mxu0 %v1125_v31 }
  0xb0   :  { %1028 = vmatpush3.bf16.msra.mxu0 %v1126_v43  ;;  %v870_v43 = vld [vmem:[%s1357_s5] sm:$0x3] }
  0xb1   :  { %1029 = vmatprep.subr.bf16.mxu0 %v1127_v44  ;;  %v875_v44 = vrot.slane %v870_v43, %v1302_v39  ;;  %v985_v39 = vld [vmem:[#allocation3] ss:$0 sm:$0xff] }
  0xb4   :  { %1030 = vmatpush3.bf16.msra.mxu0 %v1128_v45  ;;  %v879_v45 = vrot.slane %v870_v43, %v1308_v41 }
  0xb5   :  { %1031 = vmatprep.subr.bf16.mxu0 %v1129_v46 }
  0xb8   :  { %1032 = vmatpush3.bf16.msra.mxu0 %v1130_v47 }
  0xb9   :  { %1033 = vmatprep.subr.bf16.mxu0 %v1131_v48 }
  0xbc   :  { %1034 = vmatpush3.bf16.msra.mxu0 %v1132_v49 }
  0xbd   :  { %1035 = vmatprep.subr.bf16.mxu0 %v1133_v50 }
  0xc0   :  { %1036 = vmatpush3.bf16.msra.mxu0 %v1134_v51 }
  0xc1   :  { %1037 = vmatprep.subr.bf16.mxu0 %v1135_v52 }
  0xc4   :  { %1038 = vmatpush3.bf16.msra.mxu0 %v1136_v53 }
 0x167   :  { %v310_v32 = vpop.f32.mrf.mxu0 }
 0x168   :  { %v311_v33 = vadd.f32 %v310_v32, %v207_v16  ;;  %v1150_v16 = vld [vmem:[#allocation6 + $0x110] sm:$0xff]  }
 0x169   :  { %v1085_v34 = vpop.f32.mrf.mxu0 }
 0x16a   :  { %vm316_vm1 = vcmp.ge.f32.partialorder %v311_v33, 0.0  ;;  %v317_v35 = vmul.f32 0.01, %v311_v33 }
 0x16b   :  { %v313_v36 = vpop.f32.mrf.mxu0 }
 0x16c   :  { %v318_v37 = vsel %vm316_vm1, %v311_v33, %v317_v35 }
 0x16d   :  { %v990_v38 = vpack.c.bf16 %v206_v12, %v318_v37  ;;  %v1086_v40 = vpop.f32.mrf.mxu0  ;;  %v1162_v42 = vpack.c.bf16 %v318_v37, %v318_v37  ;;  %v1148_v12 = vld [vmem:[#allocation6 + $0x118] sm:$0xff]  }
 0x16f   :  { %991 = vst [vmem:[#allocation2] sm:$0xff] %v990_v38   ;;  %491 = vmatmul.mubr.bf16.vlgmr.msra.gmra.mxu1 %v1162_v42 }
 0x170   :  { %1046 = vmatpush3.bf16.msra.mxu1 %v1140_v55 }
 0x171   :  { %1047 = vmatprep.subr.bf16.mxu1 %v1141_v56 }
 0x174   :  { %1048 = vmatpush3.bf16.msra.mxu1 %v1142_v57 }
 0x175   :  { %1049 = vmatprep.subr.bf16.mxu1 %v1143_v58 }
 0x178   :  { %1050 = vmatpush3.bf16.msra.mxu1 %v1144_v8 }
 0x179   :  { %1051 = vmatprep.subr.bf16.mxu1 %v1145_v9 }
 0x17c   :  { %1052 = vmatpush3.bf16.msra.mxu1 %v1146_v10 }
 0x17d   :  { %1053 = vmatprep.subr.bf16.mxu1 %v1147_v11 }
 0x180   :  { %1054 = vmatpush3.bf16.msra.mxu1 %v1148_v12 }
 0x22f   :  { %v1017_v59 = vpop.f32.mrf.mxu1 }
 0x231   :  { %v1018_v60 = vpop.f32.mrf.mxu1 }
 0x232   :  { %v1019_v61 = vadd.f32 %v1018_v60, %v1017_v59 }
 0x233   :  { %v1020_v62 = vpop.f32.mrf.mxu1 }
 0x234   :  { %v493_v63 = vadd.f32 %v1019_v61, %v1331_v13  ;;  %v1149_v13 = vld [vmem:[#allocation6 + $0x150] sm:$0xff]  }
 0x235   :  { %v1021_v0 = vpop.f32.mrf.mxu1  ;;  %1055 = vmatprep.subr.bf16.mxu1 %v1149_v13 }
 0x236   :  { %vm498_vm2 = vcmp.ge.f32.partialorder %v493_v63, 0.0  ;;  %v499_v1 = vmul.f32 0.01, %v493_v63  ;;  %1056 = vmatpush3.bf16.msra.mxu1 %v1150_v16 }
 0x237   :  { %1057 = vmatprep.subr.bf16.mxu1 %v1151_v17 }
 0x238   :  { %v500_v2 = vsel %vm498_vm2, %v493_v63, %v499_v1 }
 0x239   :  { %v501_v3 = vpack.c.bf16 %v500_v2, %v500_v2 }
 0x23a   :  { %1058 = vmatpush3.bf16.msra.mxu1 %v1152_v18 }
 0x23b   :  { %502 = vst [vmem:[#allocation2 + $0x4] sm:$0xf] %v501_v3  ;;  %1059 = vmatprep.subr.bf16.mxu1 %v1153_v19 }
 0x23e   :  { %1060 = vmatpush3.bf16.msra.mxu1 %v1154_v20 }
 0x242   :  { %v503_v4 = vld [vmem:[#allocation2] sm:$0xff] }
 0x243   :  { %v949_v5 = vcombine.high %v503_v4, %v503_v4  ;;  %v948_v6 = vcombine.low %v503_v4, %v503_v4 }
 0x245   :  { %672 = vmatprep.mubr.bf16.mxu0 %v949_v5 }
 0x246   :  { %673 = vmatmul.mubr.bf16.vlgmr.msra.gmra.mxu0 %v948_v6 }
 0x306   :  { %v1039_v21 = vpop.f32.mrf.mxu0 }
 0x308   :  { %v1040_v22 = vpop.f32.mrf.mxu0 }
 0x309   :  { %v1041_v23 = vadd.f32 %v1040_v22, %v1039_v21 }
 0x30a   :  { %v1042_v24 = vpop.f32.mrf.mxu0 }
 0x30b   :  { %v675_v25 = vadd.f32 %v1041_v23, %v1333_v14 }
 0x30c   :  { %v1043_v26 = vpop.f32.mrf.mxu0 }
 0x30d   :  { %vm680_vm3 = vcmp.ge.f32.partialorder %v675_v25, 0.0  ;;  %v681_v27 = vmul.f32 0.01, %v675_v25 }
 0x30f   :  { %v682_v28 = vsel %vm680_vm3, %v675_v25, %v681_v27 }
 0x310   :  { %v683_v29 = vpack.c.bf16 %v682_v28, %v682_v28 }
 0x312   :  { %684 = vst [vmem:[#allocation2] sm:$0xf] %v683_v29 }
 0x319   :  { %v685_v30 = vld [vmem:[#allocation2] sm:$0xff] }
 0x31a   :  { %v967_v31 = vcombine.high %v685_v30, %v685_v30  ;;  %v966_v32 = vcombine.low %v685_v30, %v685_v30 }
 0x31c   :  { %854 = vmatprep.mubr.bf16.mxu1 %v967_v31 }
 0x31d   :  { %855 = vmatmul.mubr.bf16.vlgmr.msra.gmra.mxu1 %v966_v32 }
 0x3dd   :  { %v1061_v33 = vpop.f32.mrf.mxu1 }
 0x3df   :  { %v1062_v34 = vpop.f32.mrf.mxu1 }
 0x3e0   :  { %v1063_v35 = vadd.f32 %v1062_v34, %v1061_v33 }
 0x3e1   :  { %v1064_v36 = vpop.f32.mrf.mxu1 }
 0x3e2   :  { %v857_v37 = vadd.f32 %v1063_v35, %v1335_v15  ;;  %v984_v15 = vld [vmem:[%s1358_s6] ss:$0 sm:$0xff] }
 0x3e3   :  { %v1065_v38 = vpop.f32.mrf.mxu1  ;;  %v894_v51 = vmul.f32 %v984_v15, %v1276_v7 }
 0x3e4   :  { %vm862_vm4 = vcmp.ge.f32.partialorder %v857_v37, 0.0  ;;  %v863_v14 = vmul.f32 0.01, %v857_v37 }
 0x3e5   :  { %v896_v53 = vsel %vm895_vm5, %v894_v51, 0.0 }
 0x3e6   :  { %v864_v40 = vsel %vm862_vm4, %v857_v37, %v863_v14 }
 0x3e7   :  { %v865_v42 = vpack.c.bf16 %v864_v40, %v864_v40 }
 0x3e9   :  { %866 = vst [vmem:[#allocation2 + $0x4] sm:$0xf] %v865_v42 }
 0x3f0   :  { %v867_v46 = vld [vmem:[#allocation2] sm:$0xff] }
 0x3f1   :  { %v868_v47 = vunpack.c.l.bf16 %v867_v46  ;;  %v869_v48 = vunpack.c.h.bf16 %v867_v46 }
 0x3f3   :  { %v882_v49 = vmul.f32 %v875_v44, %v868_v47  ;;  %v883_v50 = vmul.f32 %v879_v45, %v869_v48 }
 0x3f5   :  { %v884_v52 = vadd.f32 %v883_v50, %v882_v49 }
 0x3f7   :  { %885 = vadd.xlane.f32.xlu1 %v884_v52 }
 0x3fb   :  { %897 = vadd.xlane.f32.xlu1 %v896_v53 }
 0x480   :  { %v886_v54 = vpop.xlane.xlu1 %885 }
 0x484   :  { %v898_v55 = vpop.xlane.xlu1 %897 }
 0x485   :  { %v899_v41 = vadd.f32 %v898_v55, %v886_v54 }
 0x487   :  { %v907_v56 = vadd.f32 %v985_v39, %v899_v41 }
 0x489   :  { %v986_v57 = vmul.f32 -1.442695, %v907_v56 }
 0x48b   :  { %1157 = vpow2.f32 %v986_v57 }
 0x498   :  { %v1158_v58 = vpop.eup %1157 }
 0x499   :  { %v911_v59 = vadd.f32 1.0, %v1158_v58 }
 0x49b   :  { %1159 = vrcp.f32 %v911_v59 }
 0x4a8   :  { %v1160_v60 = vpop.eup %1159 }
 0x4a9   :  { %915 = vst.msk [vmem:[%s1360_s8] sm:$0xff] %vm914_vm6, %v1160_v60 }
 0x4aa   :  { %920 = vsyncpa [#allocation5], 1 }
 0x4ab   :  { %921 = vsyncpa [#allocation7], 1 }

</bundles_post_ra>
